<compile_context>
chip_gen: v7x
topology: tpu7x:2x2x1
jax: 0.10.0
libtpu: 0.0.40
codegen_flags: <defaults>
</compile_context>

<pallas_src>
import jax
import jax.numpy as jnp
from jax.experimental import pallas as pl
from jax.experimental.pallas import tpu as pltpu

N = 200            # per the reference module
IN_DIM = 2 * N     # 400
HID = 32
OUT = 5
PAD = 128          # lane-dense output width (full vreg lane span)


def fusion_kernel(x_ref, w1_ref, b1_ref, w2_ref, b2_ref, slab_ref):
    # x_ref  : [TB, IN_DIM]            (f32 or bf16)
    # w1_ref : [IN_DIM, PAD]  cols [HID:] are zero
    # b1_ref : [1, PAD]       cols [HID:] are zero                    (f32)
    # w2_ref : [PAD, PAD]     only [0:HID, HID:HID+OUT] is nonzero
    # b2_ref : [1, PAD]       only [HID:HID+OUT] is nonzero           (f32)
    # slab_ref: [TB, PAD] f32: cols [0,HID) = feature, [HID,HID+OUT) = out
    x = x_ref[...]
    w1 = w1_ref[...]
    w2 = w2_ref[...]

    # fc1 (pre-activation "feature"); padded cols >= HID stay exactly 0.
    feat = jnp.dot(x, w1, preferred_element_type=jnp.float32) + b1_ref[...]
    # LeakyReLU(0.1) on the VPU (0 stays 0 in the padded lanes).
    h = jnp.where(feat >= 0, feat, 0.1 * feat)
    # fc2; result lands in cols [HID, HID+OUT); all other cols are exactly 0.
    out = jnp.dot(h.astype(w2.dtype), w2,
                  preferred_element_type=jnp.float32) + b2_ref[...]
    # Disjoint nonzero lane ranges -> one unmasked, lane-dense 128-wide store.
    slab_ref[...] = feat + out


def fusion_net(x, w1, b1, w2, b2, *, compute_dtype=jnp.float32, block_b=1024):
    """Returns (out, feature), matching the PyTorch module's forward().

    x: [B, IN_DIM]; w1: [IN_DIM, HID]; b1: [HID] or [1, HID];
    w2: [HID, OUT]; b2: [OUT] or [1, OUT].
    compute_dtype: dtype fed to the MXU (f32 for exact parity, bf16 to halve
                   the memory-bound HBM read of x). Accumulation is always f32.
    block_b: batch tile size (multiple of 8).
    """
    B = x.shape[0]
    f32 = jnp.float32

    # ---- pack weights/biases into the lane-dense 128-wide slab layout ------
    w1p = jnp.zeros((IN_DIM, PAD), f32).at[:, :HID].set(w1.astype(f32))
    b1p = jnp.zeros((1, PAD), f32).at[:, :HID].set(b1.reshape(1, HID).astype(f32))
    w2p = jnp.zeros((PAD, PAD), f32).at[:HID, HID:HID + OUT].set(w2.astype(f32))
    b2p = jnp.zeros((1, PAD), f32).at[:, HID:HID + OUT].set(
        b2.reshape(1, OUT).astype(f32))

    x = x.astype(compute_dtype)
    w1p = w1p.astype(compute_dtype)
    w2p = w2p.astype(compute_dtype)
    # biases stay f32 (added after the f32 accumulation)

    # ---- batch tiling: pad B up so the tile obeys the (8, 128) rule --------
    b_pad = -(-B // 8) * 8                       # round up to sublane multiple
    if b_pad <= block_b:
        tb = b_pad                               # single tile (still mult. of 8)
    else:
        tb = block_b                             # multiple of 8 by construction
        b_pad = -(-B // tb) * tb
    if b_pad != B:
        x = jnp.pad(x, ((0, b_pad - B), (0, 0)))

    grid = (b_pad // tb,)
    itemsize = jnp.dtype(compute_dtype).itemsize
    cost = pl.CostEstimate(
        flops=2 * b_pad * (IN_DIM * PAD + PAD * PAD),
        transcendentals=0,
        bytes_accessed=(b_pad * IN_DIM * itemsize          # x stream
                        + (IN_DIM + PAD) * PAD * itemsize  # w1p, w2p
                        + 2 * PAD * 4                      # biases
                        + b_pad * PAD * 4),                # output slab
    )

    slab = pl.pallas_call(
        fusion_kernel,
        out_shape=jax.ShapeDtypeStruct((b_pad, PAD), f32),
        grid=grid,
        in_specs=[
            pl.BlockSpec((tb, IN_DIM), lambda i: (i, 0)),    # x: streamed
            pl.BlockSpec((IN_DIM, PAD), lambda i: (0, 0)),   # w1: resident
            pl.BlockSpec((1, PAD), lambda i: (0, 0)),        # b1: resident
            pl.BlockSpec((PAD, PAD), lambda i: (0, 0)),      # w2: resident
            pl.BlockSpec((1, PAD), lambda i: (0, 0)),        # b2: resident
        ],
        out_specs=pl.BlockSpec((tb, PAD), lambda i: (i, 0)),
        compiler_params=pltpu.CompilerParams(
            dimension_semantics=("parallel",)),              # megacore on v7x
        cost_estimate=cost,
    )(x, w1p, b1p, w2p, b2p)

    feature = slab[:B, :HID]
    out = slab[:B, HID:HID + OUT]
    return out, feature


def init_params(key):
    # Deterministic synthetic init (uniform, roughly PyTorch Linear scale).
    k1, k2, k3, k4 = jax.random.split(key, 4)
    bound1 = 1.0 / jnp.sqrt(IN_DIM)
    bound2 = 1.0 / jnp.sqrt(HID)
    w1 = jax.random.uniform(k1, (IN_DIM, HID), jnp.float32, -bound1, bound1)
    b1 = jax.random.uniform(k2, (1, HID), jnp.float32, -bound1, bound1)
    w2 = jax.random.uniform(k3, (HID, OUT), jnp.float32, -bound2, bound2)
    b2 = jax.random.uniform(k4, (1, OUT), jnp.float32, -bound2, bound2)
    return w1, b1, w2, b2


def reference(x, w1, b1, w2, b2):
    feature = x @ w1 + b1.reshape(1, -1)
    h = jnp.where(feature >= 0, feature, 0.1 * feature)
    out = h @ w2 + b2.reshape(1, -1)
    return out, feature


if __name__ == "__main__":
    key = jax.random.PRNGKey(0)
    kx, kp, kx2 = jax.random.split(key, 3)
    w1, b1, w2, b2 = init_params(kp)

    # 1) Small batch, f32 — exact semantics of the PyTorch module.
    B = 4
    x = jax.random.normal(kx, (B, IN_DIM), jnp.float32)
    out, feature = fusion_net(x, w1, b1, w2, b2)
    jax.block_until_ready((out, feature))
    ref_out, ref_feat = reference(x, w1, b1, w2, b2)
    assert out.shape == (B, OUT) and feature.shape == (B, HID)
    assert jnp.allclose(out, ref_out, atol=2e-5, rtol=2e-5)
    assert jnp.allclose(feature, ref_feat, atol=2e-5, rtol=2e-5)

    # 2) Ragged batch with a small tile -> exercises grid > 1 and batch padding.
    B2 = 100
    x2 = jax.random.normal(kx2, (B2, IN_DIM), jnp.float32)
    out2, feat2 = fusion_net(x2, w1, b1, w2, b2, block_b=32)
    jax.block_until_ready((out2, feat2))
    ref_out2, ref_feat2 = reference(x2, w1, b1, w2, b2)
    assert out2.shape == (B2, OUT) and feat2.shape == (B2, HID)
    assert jnp.allclose(out2, ref_out2, atol=2e-5, rtol=2e-5)
    assert jnp.allclose(feat2, ref_feat2, atol=2e-5, rtol=2e-5)

    # 3) bf16 MXU inputs (memory-bound optimization): relaxed tolerance vs f32.
    out3, feat3 = fusion_net(x2, w1, b1, w2, b2,
                             compute_dtype=jnp.bfloat16, block_b=32)
    jax.block_until_ready((out3, feat3))
    assert jnp.allclose(out3, ref_out2, atol=5e-2, rtol=5e-2)
    assert jnp.allclose(feat3, ref_feat2, atol=5e-2, rtol=5e-2)

    print("KERNEL_OK")
</pallas_src>

<mosaic_0001>
module attributes {stable_mosaic.version = 11 : i64} {
  func.func @fusion_kernel(%arg0: i32, %arg1: memref<8x400xf32, #tpu.memory_space<vmem>>, %arg2: memref<400x128xf32, #tpu.memory_space<vmem>>, %arg3: memref<1x128xf32, #tpu.memory_space<vmem>>, %arg4: memref<128x128xf32, #tpu.memory_space<vmem>>, %arg5: memref<1x128xf32, #tpu.memory_space<vmem>>, %arg6: memref<8x128xf32, #tpu.memory_space<vmem>>) attributes {dimension_semantics = [#tpu.dimension_semantics<parallel>], iteration_bounds = array<i64: 1>, scalar_prefetch = 0 : i64, scratch_operands = 0 : i64, tpu.core_type = #tpu.core_type<tc>, window_params = [{transform_indices = @transform_0, window_bounds = array<i64: 8, 400>}, {pipeline_mode = #tpu.pipeline_mode<synchronous>, transform_indices = @transform_1, window_bounds = array<i64: 400, 128>}, {pipeline_mode = #tpu.pipeline_mode<synchronous>, transform_indices = @transform_2, window_bounds = array<i64: 1, 128>}, {pipeline_mode = #tpu.pipeline_mode<synchronous>, transform_indices = @transform_3, window_bounds = array<i64: 128, 128>}, {pipeline_mode = #tpu.pipeline_mode<synchronous>, transform_indices = @transform_4, window_bounds = array<i64: 1, 128>}, {transform_indices = @transform_5, window_bounds = array<i64: 8, 128>}]} {
    %c0 = arith.constant 0 : index
    %c0_0 = arith.constant 0 : index
    %0 = vector.load %arg1[%c0, %c0_0] : memref<8x400xf32, #tpu.memory_space<vmem>>, vector<8x400xf32>
    %c0_1 = arith.constant 0 : index
    %c0_2 = arith.constant 0 : index
    %1 = vector.load %arg2[%c0_1, %c0_2] : memref<400x128xf32, #tpu.memory_space<vmem>>, vector<400x128xf32>
    %c0_3 = arith.constant 0 : index
    %c0_4 = arith.constant 0 : index
    %2 = vector.load %arg4[%c0_3, %c0_4] : memref<128x128xf32, #tpu.memory_space<vmem>>, vector<128x128xf32>
    %cst = arith.constant dense<0.000000e+00> : vector<8x128xf32>
    %3 = tpu.matmul %0, %1, %cst {dimension_numbers = #tpu.dot_dimension_numbers<[1], [0], [0], [1], [0, 0, 1, 1], [], []>} : vector<8x400xf32>, vector<400x128xf32>, vector<8x128xf32> -> vector<8x128xf32>
    %c0_5 = arith.constant 0 : index
    %c0_6 = arith.constant 0 : index
    %4 = vector.load %arg3[%c0_5, %c0_6] : memref<1x128xf32, #tpu.memory_space<vmem>>, vector<1x128xf32>
    %5 = vector.broadcast %4 : vector<1x128xf32> to vector<8x128xf32>
    %6 = arith.addf %3, %5 : vector<8x128xf32>
    %cst_7 = arith.constant 0.000000e+00 : f32
    %7 = vector.broadcast %cst_7 : f32 to vector<8x128xf32>
    %8 = arith.cmpf oge, %6, %7 : vector<8x128xf32>
    %cst_8 = arith.constant 1.000000e-01 : f32
    %9 = vector.broadcast %cst_8 : f32 to vector<8x128xf32>
    %10 = arith.mulf %9, %6 : vector<8x128xf32>
    %11 = arith.select %8, %6, %10 : vector<8x128xi1>, vector<8x128xf32>
    %cst_9 = arith.constant dense<0.000000e+00> : vector<8x128xf32>
    %12 = tpu.matmul %11, %2, %cst_9 {dimension_numbers = #tpu.dot_dimension_numbers<[1], [0], [0], [1], [0, 0, 1, 1], [], []>} : vector<8x128xf32>, vector<128x128xf32>, vector<8x128xf32> -> vector<8x128xf32>
    %c0_10 = arith.constant 0 : index
    %c0_11 = arith.constant 0 : index
    %13 = vector.load %arg5[%c0_10, %c0_11] : memref<1x128xf32, #tpu.memory_space<vmem>>, vector<1x128xf32>
    %14 = vector.broadcast %13 : vector<1x128xf32> to vector<8x128xf32>
    %15 = arith.addf %12, %14 : vector<8x128xf32>
    %16 = arith.addf %6, %15 : vector<8x128xf32>
    %c0_12 = arith.constant 0 : index
    %c0_13 = arith.constant 0 : index
    %17 = vector.load %arg6[%c0_12, %c0_13] : memref<8x128xf32, #tpu.memory_space<vmem>>, vector<8x128xf32>
    tpu.vector_store %arg6[%c0_12, %c0_13], %16 {strides = array<i32>} : memref<8x128xf32, #tpu.memory_space<vmem>>, vector<8x128xf32>,
    return
  }
  func.func @transform_0(%arg0: i32) -> (i32, i32) {
    %c0_i32 = arith.constant 0 : i32
    %c0_i32_0 = arith.constant 0 : i32
    return %arg0, %c0_i32 : i32, i32
  }
  func.func @transform_1(%arg0: i32) -> (i32, i32) {
    %c0_i32 = arith.constant 0 : i32
    %c0_i32_0 = arith.constant 0 : i32
    %c0_i32_1 = arith.constant 0 : i32
    return %c0_i32, %c0_i32_0 : i32, i32
  }
  func.func @transform_2(%arg0: i32) -> (i32, i32) {
    %c0_i32 = arith.constant 0 : i32
    %c0_i32_0 = arith.constant 0 : i32
    %c0_i32_1 = arith.constant 0 : i32
    return %c0_i32, %c0_i32_0 : i32, i32
  }
  func.func @transform_3(%arg0: i32) -> (i32, i32) {
    %c0_i32 = arith.constant 0 : i32
    %c0_i32_0 = arith.constant 0 : i32
    %c0_i32_1 = arith.constant 0 : i32
    return %c0_i32, %c0_i32_0 : i32, i32
  }
  func.func @transform_4(%arg0: i32) -> (i32, i32) {
    %c0_i32 = arith.constant 0 : i32
    %c0_i32_0 = arith.constant 0 : i32
    %c0_i32_1 = arith.constant 0 : i32
    return %c0_i32, %c0_i32_0 : i32, i32
  }
  func.func @transform_5(%arg0: i32) -> (i32, i32) {
    %c0_i32 = arith.constant 0 : i32
    %c0_i32_0 = arith.constant 0 : i32
    return %arg0, %c0_i32 : i32, i32
  }
}

</mosaic_0001>

<bundles_post_ra>
// kernel: tpu_custom_call.1
= control target key start
LH: loop header
LB: loop body
LE: loop exit
PB: predicated region body
PF: predicated region fallthrough
CT: control target
= control target key end

     0   :  { %10 = vsyncpa [#allocation3], 0  ;;  %s772_s0 = inlined_call_operand.hbm [shape: f32[8,400], index: 0, kind: input, shape index: {}]   ;;  %s773_s1 = inlined_call_operand.hbm [shape: f32[400,128], index: 1, kind: input, shape index: {}]   ;;  %s774_s2 = inlined_call_operand.vmem [shape: f32[1,128], index: 2, kind: input, shape index: {}]   ;;  %s775_s3 = inlined_call_operand.hbm [shape: f32[128,128], index: 3, kind: input, shape index: {}]   ;;  %s776_s4 = inlined_call_operand.vmem [shape: f32[1,128], index: 4, kind: input, shape index: {}]   ;;  %s777_s5 = inlined_call_operand.hbm [shape: f32[8,128], index: 5, kind: output, shape index: {}]  }
   0x1   :  { %11 = vsyncpa [#allocation6], 0 }
   0x2   :  { %12 = vsyncpa [#allocation4], 0  ;;  %s655_s18 = smov [#allocation5]   ;;  %s561_s22 = scalar_lea.hbm %s773_s1, 6400 }
   0x3   :  { %s28_s19 = sshll.u32 %s655_s18, 4  ;;  %p562_p0 = scmp.ne.s32.totalorder %s773_s1, %s561_s22  ;;  %s29_s19 = int_to_ptr.vmem [resolvable:$true] %s28_s19 }
   0x4   :  { %p565_p1 = scmp.lt.u32.totalorder %s561_s22, %s773_s1 }
   0x6   :  { %p567_p2 = pnand %p565_p1, %p562_p0 }
   0x8   :  { %570 = shalt.err (!%p567_p2)
}
   0x9   :  { %s571_s27 = scalar_lea.vmem %s29_s19, 6400  ;;  %p576_p4 = scmp.lt.s32.totalorder %s29_s19, %s29_s19 }
   0xa   :  { %p572_p3 = scmp.ne.s32.totalorder %s29_s19, %s571_s27  ;;  %p577_p5 = scmp.lt.s32.totalorder %s571_s27, %s571_s27 }
   0xc   :  { %p578_p6 = por %p577_p5, %p576_p4 }
   0xe   :  { %p579_p7 = pnand %p578_p6, %p572_p3 }
  0x10   :  { %582 = shalt.err (!%p579_p7)
}
  0x11   :  { %s656_s28 = smov 128   ;;  %s657_s29 = smov 8  }
  0x12   :  { %34 = dma.hbm_to_vmem [thread:$0]  %s773_s1, 6400, %s29_s19, [#allocation6], %s656_s28, %s656_s28, %s657_s29  }
  0x13   :  { %s658_s7 = smov [#allocation2]   ;;  %s659_s9 = smov [#allocation7]  }
  0x14   :  { %s19_s8 = sshll.u32 %s658_s7, 4  ;;  %s42_s10 = sshll.u32 %s659_s9, 4  ;;  %s20_s8 = int_to_ptr.vmem [resolvable:$true] %s19_s8  ;;  %s43_s10 = int_to_ptr.vmem [resolvable:$true] %s42_s10 }
  0x15   :  { %s583_s13 = scalar_lea.hbm %s772_s0, 512 }
  0x16   :  { %p584_p8 = scmp.ne.s32.totalorder %s772_s0, %s583_s13  ;;  %p587_p9 = scmp.lt.u32.totalorder %s583_s13, %s772_s0 }
  0x18   :  { %p589_p10 = pnand %p587_p9, %p584_p8 }
  0x1a   :  { %592 = shalt.err (!%p589_p10)
}
  0x1b   :  { %s593_s1 = scalar_lea.vmem %s20_s8, 512  ;;  %p598_p12 = scmp.lt.s32.totalorder %s20_s8, %s20_s8 }
  0x1c   :  { %p594_p11 = scmp.ne.s32.totalorder %s20_s8, %s593_s1  ;;  %p599_p13 = scmp.lt.s32.totalorder %s593_s1, %s593_s1 }
  0x1e   :  { %p600_p0 = por %p599_p13, %p598_p12 }
  0x20   :  { %p601_p1 = pnand %p600_p0, %p594_p11 }
  0x22   :  { %604 = shalt.err (!%p601_p1)
}
  0x23   :  { %22 = dma.hbm_to_vmem [thread:$0]  %s772_s0, 512, %s20_s8, [#allocation3]  }
  0x24   :  { %s605_s22 = scalar_lea.hbm %s775_s3, 2048 }
  0x25   :  { %p606_p2 = scmp.ne.s32.totalorder %s775_s3, %s605_s22  ;;  %p609_p3 = scmp.lt.u32.totalorder %s605_s22, %s775_s3 }
  0x27   :  { %p611_p4 = pnand %p609_p3, %p606_p2 }
  0x29   :  { %614 = shalt.err (!%p611_p4)
}
  0x2a   :  { %s615_s27 = scalar_lea.vmem %s43_s10, 2048  ;;  %p620_p6 = scmp.lt.s32.totalorder %s43_s10, %s43_s10 }
  0x2b   :  { %p616_p5 = scmp.ne.s32.totalorder %s43_s10, %s615_s27  ;;  %p621_p7 = scmp.lt.s32.totalorder %s615_s27, %s615_s27 }
  0x2d   :  { %p622_p8 = por %p621_p7, %p620_p6 }
  0x2f   :  { %p623_p9 = pnand %p622_p8, %p616_p5 }
  0x31   :  { %626 = shalt.err (!%p623_p9)
}
  0x32   :  { %48 = dma.hbm_to_vmem [thread:$0]  %s775_s3, 2048, %s43_s10, [#allocation6], %s656_s28, %s656_s28, %s657_s29  }
  0x33   :  { %649 = dma.done.wait [#allocation3], 512  }
  0x34   :  { %650 = vsyncadd [#allocation3], 4294966784 }
  0x35   :  { %651 = dma.done.wait [#allocation6], 8448  }
  0x36   :  { %652 = vsyncadd [#allocation6], 4294958848  ;;  %v660_v0 = vmov 0.0|0.0   ;;  %v80_v1 = vld [vmem:[#allocation5 + $0x80] sm:$0xff]  ;;  %v81_v2 = vld [vmem:[#allocation5 + $0x88] sm:$0xff]  ;;  %vm137_vm0 = vcmask 130048  }
  0x37   :  { %501 = vmatprep.subr.bf16.mxu1 %v660_v0  ;;  %v64_v3 = vld [vmem:[#allocation5] sm:$0xff]  ;;  %v469_v4 = vpack.c.bf16 %v81_v2, %v80_v1  ;;  %v65_v5 = vld [vmem:[#allocation5 + $0x8] sm:$0xff]  ;;  %v82_v10 = vld [vmem:[#allocation5 + $0x90] sm:$0xff]  ;;  %vm661_vm1 = vmmov 0   ;;  %s663_s7 = smov [#allocation8]  }
  0x38   :  { %v96_v6 = vld [vmem:[#allocation5 + $0x100] sm:$0xff]  ;;  %v97_v7 = vld [vmem:[#allocation5 + $0x108] sm:$0xff]  ;;  %v471_v8 = vpack.c.bf16 %v65_v5, %v64_v3  ;;  %v83_v11 = vld [vmem:[#allocation5 + $0x98] sm:$0xff]  ;;  %s369_s8 = sshll.u32 %s663_s7, 4  ;;  %s370_s8 = int_to_ptr.vmem [resolvable:$true] %s369_s8 }
  0x39   :  { %v502_v9 = vpack.c.bf16 %v97_v7, %v96_v6  ;;  %v66_v12 = vld [vmem:[#allocation5 + $0x10] sm:$0xff]  ;;  %470 = vmatprep.subr.bf16.mxu0 %v469_v4  ;;  %v473_v13 = vpack.c.bf16 %v83_v11, %v82_v10  ;;  %v67_v14 = vld [vmem:[#allocation5 + $0x18] sm:$0xff]  ;;  %v84_v19 = vld [vmem:[#allocation5 + $0xa0] sm:$0xff]  ;;  %p632_p11 = scmp.lt.s32.totalorder %s370_s8, %s370_s8 }
  0x3a   :  { %v98_v15 = vld [vmem:[#allocation5 + $0x110] sm:$0xff]  ;;  %v99_v16 = vld [vmem:[#allocation5 + $0x118] sm:$0xff]  ;;  %472 = vmatpush3.bf16.msra.mxu0 %v471_v8  ;;  %v475_v17 = vpack.c.bf16 %v67_v14, %v66_v12  ;;  %v85_v20 = vld [vmem:[#allocation5 + $0xa8] sm:$0xff] }
  0x3b   :  { %503 = vmatpush1.bf16.msra.mxu1 %v502_v9  ;;  %v505_v18 = vpack.c.bf16 %v99_v16, %v98_v15  ;;  %v68_v21 = vld [vmem:[#allocation5 + $0x20] sm:$0xff]  ;;  %474 = vmatprep.subr.bf16.mxu0 %v473_v13  ;;  %v477_v22 = vpack.c.bf16 %v85_v20, %v84_v19  ;;  %v69_v23 = vld [vmem:[#allocation5 + $0x28] sm:$0xff]  ;;  %v86_v26 = vld [vmem:[#allocation5 + $0xb0] sm:$0xff] }
  0x3c   :  { %504 = vmatprep.subr.bf16.mxu1 %v660_v0  ;;  %v100_v24 = vld [vmem:[#allocation5 + $0x120] sm:$0xff]  ;;  %v101_v25 = vld [vmem:[#allocation5 + $0x128] sm:$0xff]  ;;  %v87_v27 = vld [vmem:[#allocation5 + $0xb8] sm:$0xff]  ;;  %v479_v28 = vpack.c.bf16 %v69_v23, %v68_v21 }
  0x3d   :  { %v508_v29 = vpack.c.bf16 %v101_v25, %v100_v24  ;;  %v70_v30 = vld [vmem:[#allocation5 + $0x30] sm:$0xff]  ;;  %v481_v31 = vpack.c.bf16 %v87_v27, %v86_v26  ;;  %v71_v32 = vld [vmem:[#allocation5 + $0x38] sm:$0xff]  ;;  %v88_v35 = vld [vmem:[#allocation5 + $0xc0] sm:$0xff] }
  0x3e   :  { %476 = vmatpush3.bf16.msra.mxu0 %v475_v17  ;;  %v102_v33 = vld [vmem:[#allocation5 + $0x130] sm:$0xff]  ;;  %v103_v34 = vld [vmem:[#allocation5 + $0x138] sm:$0xff]  ;;  %v89_v36 = vld [vmem:[#allocation5 + $0xc8] sm:$0xff]  ;;  %v483_v37 = vpack.c.bf16 %v71_v32, %v70_v30 }
  0x3f   :  { %506 = vmatpush1.bf16.msra.mxu1 %v505_v18  ;;  %478 = vmatprep.subr.bf16.mxu0 %v477_v22  ;;  %v511_v38 = vpack.c.bf16 %v103_v34, %v102_v33  ;;  %v72_v39 = vld [vmem:[#allocation5 + $0x40] sm:$0xff]  ;;  %v485_v40 = vpack.c.bf16 %v89_v36, %v88_v35  ;;  %v73_v41 = vld [vmem:[#allocation5 + $0x48] sm:$0xff]  ;;  %v90_v44 = vld [vmem:[#allocation5 + $0xd0] sm:$0xff] }
  0x40   :  { %507 = vmatprep.subr.bf16.mxu1 %v660_v0  ;;  %v104_v42 = vld [vmem:[#allocation5 + $0x140] sm:$0xff]  ;;  %v105_v43 = vld [vmem:[#allocation5 + $0x148] sm:$0xff]  ;;  %v91_v45 = vld [vmem:[#allocation5 + $0xd8] sm:$0xff]  ;;  %v487_v46 = vpack.c.bf16 %v73_v41, %v72_v39  ;;  %v662_v41 = vmov 0.0  }
  0x41   :  { %v514_v47 = vpack.c.bf16 %v105_v43, %v104_v42  ;;  %v74_v48 = vld [vmem:[#allocation5 + $0x50] sm:$0xff]  ;;  %v75_v49 = vld [vmem:[#allocation5 + $0x58] sm:$0xff]  ;;  %v61_v50 = vld [vmem:[#allocation2 + $0x8] sm:$0xff]  ;;  %v489_v51 = vpack.c.bf16 %v91_v45, %v90_v44 }
  0x42   :  { %480 = vmatpush3.bf16.msra.mxu0 %v479_v28  ;;  %v106_v52 = vld [vmem:[#allocation5 + $0x150] sm:$0xff]  ;;  %v107_v53 = vld [vmem:[#allocation5 + $0x158] sm:$0xff]  ;;  %v92_v55 = vld [vmem:[#allocation5 + $0xe0] sm:$0xff]  ;;  %205 = vmatprep.mubr.f32.mxu0 %v61_v50  ;;  %v491_v57 = vpack.c.bf16 %v75_v49, %v74_v48 }
  0x43   :  { %509 = vmatpush1.bf16.msra.mxu1 %v508_v29  ;;  %482 = vmatprep.subr.bf16.mxu0 %v481_v31  ;;  %v63_v54 = vld [vmem:[#allocation2 + $0x18] sm:$0xff]  ;;  %v93_v56 = vld [vmem:[#allocation5 + $0xe8] sm:$0xff]  ;;  %v517_v58 = vpack.c.bf16 %v107_v53, %v106_v52  ;;  %v76_v59 = vld [vmem:[#allocation5 + $0x60] sm:$0xff] }
  0x44   :  { %510 = vmatprep.subr.bf16.mxu1 %v660_v0  ;;  %380 = vmatprep.mubr.msk.f32.mxu1 %vm137_vm0, %v63_v54  ;;  %v493_v60 = vpack.c.bf16 %v93_v56, %v92_v55  ;;  %v77_v61 = vld [vmem:[#allocation5 + $0x68] sm:$0xff]  ;;  %v108_v62 = vld [vmem:[#allocation5 + $0x160] sm:$0xff]  ;;  %v94_v1 = vld [vmem:[#allocation5 + $0xf0] sm:$0xff] }
  0x45   :  { %v109_v63 = vld [vmem:[#allocation5 + $0x168] sm:$0xff]  ;;  %v95_v2 = vld [vmem:[#allocation5 + $0xf8] sm:$0xff]  ;;  %v495_v3 = vpack.c.bf16 %v77_v61, %v76_v59  ;;  %v78_v5 = vld [vmem:[#allocation5 + $0x70] sm:$0xff] }
  0x46   :  { %484 = vmatpush3.bf16.msra.mxu0 %v483_v37  ;;  %v520_v4 = vpack.c.bf16 %v109_v63, %v108_v62  ;;  %v497_v6 = vpack.c.bf16 %v95_v2, %v94_v1  ;;  %v79_v7 = vld [vmem:[#allocation5 + $0x78] sm:$0xff]  ;;  %v110_v8 = vld [vmem:[#allocation5 + $0x170] sm:$0xff]  ;;  %v112_v12 = vld [vmem:[#allocation5 + $0x180] sm:$0xff] }
  0x47   :  { %512 = vmatpush1.bf16.msra.mxu1 %v511_v38  ;;  %486 = vmatprep.subr.bf16.mxu0 %v485_v40  ;;  %v111_v9 = vld [vmem:[#allocation5 + $0x178] sm:$0xff]  ;;  %v499_v10 = vpack.c.bf16 %v79_v7, %v78_v5  ;;  %v113_v13 = vld [vmem:[#allocation5 + $0x188] sm:$0xff]  ;;  %v114_v14 = vld [vmem:[#allocation7] sm:$0xff] }
  0x48   :  { %513 = vmatprep.subr.bf16.mxu1 %v660_v0  ;;  %v523_v11 = vpack.c.bf16 %v111_v9, %v110_v8  ;;  %v115_v15 = vld [vmem:[#allocation7 + $0x8] sm:$0xff]  ;;  %v60_v16 = vld [vmem:[#allocation2] sm:$0xff]  ;;  %v526_v17 = vpack.c.bf16 %v113_v13, %v112_v12  ;;  %v117_v20 = vld [vmem:[#allocation7 + $0x18] sm:$0xff] }
  0x49   :  { %v529_v18 = vpack.c.bf16 %v115_v15, %v114_v14  ;;  %v116_v19 = vld [vmem:[#allocation7 + $0x10] sm:$0xff]  ;;  %v62_v21 = vld [vmem:[#allocation2 + $0x10] sm:$0xff]  ;;  %v119_v24 = vld [vmem:[#allocation7 + $0x28] sm:$0xff] }
  0x4a   :  { %488 = vmatpush3.bf16.msra.mxu0 %v487_v46  ;;  %v532_v22 = vpack.c.bf16 %v117_v20, %v116_v19  ;;  %v118_v23 = vld [vmem:[#allocation7 + $0x20] sm:$0xff]  ;;  %v120_v26 = vld [vmem:[#allocation7 + $0x30] sm:$0xff]  ;;  %v121_v27 = vld [vmem:[#allocation7 + $0x38] sm:$0xff] }
  0x4b   :  { %515 = vmatpush1.bf16.msra.mxu1 %v514_v47  ;;  %490 = vmatprep.subr.bf16.mxu0 %v489_v51  ;;  %v535_v25 = vpack.c.bf16 %v119_v24, %v118_v23  ;;  %v538_v28 = vpack.c.bf16 %v121_v27, %v120_v26  ;;  %v122_v29 = vld [vmem:[#allocation7 + $0x40] sm:$0xff]  ;;  %v123_v30 = vld [vmem:[#allocation7 + $0x48] sm:$0xff]  ;;  %v124_v32 = vld [vmem:[#allocation7 + $0x50] sm:$0xff] }
  0x4c   :  { %516 = vmatprep.subr.bf16.mxu1 %v660_v0  ;;  %v541_v31 = vpack.c.bf16 %v123_v30, %v122_v29  ;;  %v125_v33 = vld [vmem:[#allocation7 + $0x58] sm:$0xff]  ;;  %v126_v35 = vld [vmem:[#allocation7 + $0x60] sm:$0xff]  ;;  %v127_v36 = vld [vmem:[#allocation7 + $0x68] sm:$0xff] }
  0x4d   :  { %v544_v34 = vpack.c.bf16 %v125_v33, %v124_v32  ;;  %v547_v37 = vpack.c.bf16 %v127_v36, %v126_v35  ;;  %v128_v38 = vld [vmem:[#allocation7 + $0x70] sm:$0xff]  ;;  %v129_v39 = vld [vmem:[#allocation7 + $0x78] sm:$0xff] }
  0x4e   :  { %492 = vmatpush3.bf16.msra.mxu0 %v491_v57  ;;  %v550_v40 = vpack.c.bf16 %v129_v39, %v128_v38  ;;  %v379_v44 = vld [vmem:[%s774_s2] ss:$0 sm:$0xff]  ;;  %s627_s2 = scalar_lea.vmem %s370_s8, 128 }
  0x4f   :  { %518 = vmatpush1.bf16.msra.mxu1 %v517_v58  ;;  %494 = vmatprep.subr.bf16.mxu0 %v493_v60  ;;  %v381_v51 = vld [vmem:[%s776_s4] ss:$0 sm:$0xff]  ;;  %p628_p10 = scmp.ne.s32.totalorder %s370_s8, %s627_s2  ;;  %p633_p12 = scmp.lt.s32.totalorder %s627_s2, %s627_s2 }
  0x50   :  { %519 = vmatprep.subr.bf16.mxu1 %v660_v0 }
  0x51   :  { %p634_p13 = por %p633_p12, %p632_p11 }
  0x52   :  { %496 = vmatpush3.bf16.msra.mxu0 %v495_v3 }
  0x53   :  { %521 = vmatpush1.bf16.msra.mxu1 %v520_v4  ;;  %498 = vmatprep.subr.bf16.mxu0 %v497_v6  ;;  %p635_p0 = pnand %p634_p13, %p628_p10 }
  0x54   :  { %522 = vmatprep.subr.bf16.mxu1 %v660_v0 }
  0x56   :  { %500 = vmatpush3.bf16.msra.mxu0 %v499_v10 }
  0x57   :  { %524 = vmatpush1.bf16.msra.mxu1 %v523_v11  ;;  %528 = vmatprep.subr.bf16.mxu0 %v660_v0 }
  0x58   :  { %525 = vmatprep.subr.bf16.mxu1 %v660_v0 }
  0x59   :  { %206 = vmatmul.mubr.f32.vlgmr.msra.gmra.mrb[0].mxu0 %v60_v16 }
  0x5a   :  { %530 = vmatpush3.bf16.msra.mxu0 %v529_v18  ;;  %466 = vmatprep.mubr.msk.f32.mxu0 %vm661_vm1, %v662_v41 }
  0x5b   :  { %527 = vmatpush1.bf16.msra.mxu1 %v526_v17  ;;  %531 = vmatprep.subr.bf16.mxu0 %v660_v0 }
  0x5e   :  { %276 = vmatmul.mubr.f32.vlgmr.msra.gmra.mrb[0].mxu1 %v62_v21  ;;  %533 = vmatpush3.bf16.msra.mxu0 %v532_v22 }
  0x5f   :  { %534 = vmatprep.subr.bf16.mxu0 %v660_v0 }
  0x62   :  { %536 = vmatpush3.bf16.msra.mxu0 %v535_v25 }
  0x63   :  { %537 = vmatprep.subr.bf16.mxu0 %v660_v0 }
  0x66   :  { %539 = vmatpush3.bf16.msra.mxu0 %v538_v28 }
  0x67   :  { %540 = vmatprep.subr.bf16.mxu0 %v660_v0 }
  0x6a   :  { %542 = vmatpush3.bf16.msra.mxu0 %v541_v31 }
  0x6b   :  { %543 = vmatprep.subr.bf16.mxu0 %v660_v0 }
  0x6e   :  { %545 = vmatpush3.bf16.msra.mxu0 %v544_v34 }
  0x6f   :  { %546 = vmatprep.subr.bf16.mxu0 %v660_v0 }
  0x72   :  { %548 = vmatpush3.bf16.msra.mxu0 %v547_v37 }
  0x73   :  { %549 = vmatprep.subr.bf16.mxu0 %v660_v0 }
  0x76   :  { %551 = vmatpush3.bf16.msra.mxu0 %v550_v40 }
 0x12c   :  { %v414_v42 = vpop.f32.mrb[0].mxu0 }
 0x12d   :  { %v415_v43 = vpop.f32.mrb[1].mxu0 }
 0x12e   :  { %v416_v45 = vadd.f32 %v415_v43, %v414_v42 }
 0x130   :  { %v208_v46 = vadd.f32 %v416_v45, %v379_v44 }
 0x131   :  { %v277_v47 = vpop.f32.mrb[0].mxu1 }
 0x132   :  { %v279_v48 = vpop.f32.mrb[1].mxu1  ;;  %v278_v49 = vadd.f32 %v277_v47, %v208_v46 }
 0x134   :  { %vm281_vm2 = vcmp.ge.f32.partialorder %v278_v49, 0.0  ;;  %v282_v0 = vmul.f32 0.1, %v278_v49 }
 0x136   :  { %v283_v50 = vsel %vm281_vm2, %v278_v49, %v282_v0 }
 0x137   :  { %467 = vmatmul.mubr.f32.vlgmr.msra.gmra.mrb[2].mxu0 %v283_v50 }
 0x20a   :  { %v357_v52 = vpop.f32.mrb[2].mxu0 }
 0x20b   :  { %v358_v53 = vadd.f32 %v381_v51, %v357_v52  ;;  %v468_v54 = vpop.f32.mrb[3].mxu0 }
 0x20d   :  { %v361_v55 = vadd.f32 %v358_v53, %v278_v49 }
 0x20f   :  { %362 = vst [vmem:[#allocation8] sm:$0xff] %v361_v55 }
 0x210   :  { %638 = shalt.err (!%p635_p0)
}
 0x211   :  { %s639_s11 = scalar_lea.hbm %s777_s5, 128 }
 0x212   :  { %p640_p1 = scmp.ne.s32.totalorder %s777_s5, %s639_s11  ;;  %p643_p2 = scmp.lt.u32.totalorder %s639_s11, %s777_s5 }
 0x214   :  { %p645_p3 = pnand %p643_p2, %p640_p1 }
 0x216   :  { %648 = shalt.err (!%p645_p3)
}
 0x217   :  { %372 = dma.vmem_to_hbm [thread:$0]  %s370_s8, 128, %s777_s5, [#allocation4]  }
 0x218   :  { %653 = dma.done.wait [#allocation4], 128  }
 0x219   :  { %654 = vsyncadd [#allocation4], 4294967168 }
 0x21a   :  { %376 = vsyncpa [#allocation3], 1 }
 0x21b   :  { %377 = vsyncpa [#allocation6], 1 }
 0x21c   :  { %378 = vsyncpa [#allocation4], 1 }

</bundles_post_ra>
